<compile_context>
chip_gen: v7x
topology: tpu7x:2x2x1
jax: 0.10.0
libtpu: 0.0.40
codegen_flags: <defaults>
</compile_context>

<pallas_src>
import functools

import jax
import jax.numpy as jnp
from jax.experimental import pallas as pl
from jax.experimental.pallas import tpu as pltpu

EMBED = 32      # embedding_size (C)
EXPAND = 2      # inverted-residual expansion factor
SEQ = 16        # seq_len (L)
BATCH = 2       # batch_size (B)


def _relu6(x):
    return jnp.clip(x, 0.0, 6.0)


def _ir_cell(x, we, wp, ve, bp, mask_prev, mask_next):
    """One inverted residual block on an (N, C) tile (N = B*L).

    we: (C, E)   wp: (E, C)
    ve: (5, E)   rows = [be, wd0, wd1, wd2, bd]
    bp: (1, C)
    mask_prev / mask_next: (N, E) 0/1 masks zeroing the roll wrap-around and
    the batch-segment boundaries -> exact zero-padded k=3 depthwise-conv taps.
    """
    n = x.shape[0]
    # pointwise expansion (1x1 conv) -> MXU
    e = _relu6(jnp.dot(x, we, preferred_element_type=jnp.float32) + ve[0:1, :])
    # depthwise conv k=3, padding 1 along L: neighbour gather via XLU roll.
    # roll(e, 1, 0)[i]   == e[i-1]  (wrap at i==0, masked off)
    # roll(e, n-1, 0)[i] == e[i+1]  (wrap at i==n-1, masked off)
    e_prev = pltpu.roll(e, shift=1, axis=0) * mask_prev
    e_next = pltpu.roll(e, shift=n - 1, axis=0) * mask_next
    d = _relu6(e_prev * ve[1:2, :] + e * ve[2:3, :] + e_next * ve[3:4, :]
               + ve[4:5, :])
    # pointwise projection (1x1 conv) -> MXU, then residual add
    return x + jnp.dot(d, wp, preferred_element_type=jnp.float32) + bp


def decoder_kernel(z_ref, we_ref, wp_ref, ve_ref, vc_ref, out_ref, *, seq_len):
    n = z_ref.shape[1]            # N = B * L (whole batch, one tile)
    e_dim = ve_ref.shape[2]       # E = expansion width

    # Boundary masks built ONCE from a tiny (N, E) iota (hoisted out of the
    # per-cell body).  seq_len is a static power of two here -> bitwise and.
    row = jax.lax.broadcasted_iota(jnp.int32, (n, e_dim), 0)
    if seq_len & (seq_len - 1) == 0:
        pos = row & (seq_len - 1)
    else:
        pos = row % seq_len
    mask_prev = (pos != 0).astype(jnp.float32)            # zero at segment starts
    mask_next = (pos != seq_len - 1).astype(jnp.float32)  # zero at segment ends

    vc = vc_ref[...]                          # (4, C): rows = [bp1, bp2, bp3, h]
    h = vc[3:4, :]                            # (1, C) broadcast == self.h.expand(...)

    x = z_ref[0] + h
    x = _ir_cell(x, we_ref[0], wp_ref[0], ve_ref[0], vc[0:1, :], mask_prev, mask_next)
    x = x + z_ref[1]
    x = _ir_cell(x, we_ref[1], wp_ref[1], ve_ref[1], vc[1:2, :], mask_prev, mask_next)
    x = x + z_ref[2]
    x = _ir_cell(x, we_ref[2], wp_ref[2], ve_ref[2], vc[2:3, :], mask_prev, mask_next)

    out_ref[...] = x.astype(out_ref.dtype)


def segment_hierarchy_decoder(z1, z2, z3, params):
    """z1, z2, z3: (B, L, C) float32.  Returns (B, L, C) float32."""
    B, L, C = z1.shape
    N = B * L
    cells = params["cells"]

    # Pack inputs/parameters into 5 slabs -> 5 DMAs instead of 7/19.
    z_all = jnp.stack([z1.reshape(N, C), z2.reshape(N, C), z3.reshape(N, C)])  # (3, N, C)
    we_all = jnp.stack([c["we"] for c in cells])                               # (3, C, E)
    wp_all = jnp.stack([c["wp"] for c in cells])                               # (3, E, C)
    ve_all = jnp.stack([jnp.concatenate([c["be"], c["wd"], c["bd"]], axis=0)
                        for c in cells])                                       # (3, 5, E)
    vc_all = jnp.concatenate([c["bp"] for c in cells] + [params["h"]],
                             axis=0)                                           # (4, C)

    kernel = functools.partial(decoder_kernel, seq_len=L)

    vmem_spec = pl.BlockSpec(memory_space=pltpu.MemorySpace.VMEM)
    out = pl.pallas_call(
        kernel,
        out_shape=jax.ShapeDtypeStruct((N, C), jnp.float32),
        in_specs=[vmem_spec] * 5,
        out_specs=vmem_spec,
    )(z_all, we_all, wp_all, ve_all, vc_all)
    return out.reshape(B, L, C)


# ---------------- pure-JAX reference (for correctness check) ----------------
def _ref_ir_cell(x, we, be, wd, bd, wp, bp):
    e = jnp.clip(x @ we + be[0], 0.0, 6.0)
    zp = jnp.zeros((1, e.shape[1]), e.dtype)
    e_prev = jnp.concatenate([zp, e[:-1]], axis=0)
    e_next = jnp.concatenate([e[1:], zp], axis=0)
    d = jnp.clip(e_prev * wd[0] + e * wd[1] + e_next * wd[2] + bd[0], 0.0, 6.0)
    return x + d @ wp + bp[0]


def _ref_forward(z1, z2, z3, params):
    outs = []
    c1, c2, c3 = params["cells"]
    for b in range(z1.shape[0]):
        x1 = z1[b] + params["h"]
        y1 = _ref_ir_cell(x1, c1["we"], c1["be"], c1["wd"], c1["bd"], c1["wp"], c1["bp"])
        x2 = y1 + z2[b]
        y2 = _ref_ir_cell(x2, c2["we"], c2["be"], c2["wd"], c2["bd"], c2["wp"], c2["bp"])
        x3 = y2 + z3[b]
        y3 = _ref_ir_cell(x3, c3["we"], c3["be"], c3["wd"], c3["bd"], c3["wp"], c3["bp"])
        outs.append(y3)
    return jnp.stack(outs, axis=0)


def init_params(key, C=EMBED, expand=EXPAND):
    E = C * expand
    key, kh = jax.random.split(key)
    # PyTorch initializes h (the (1, C, 1) parameter, stored here squeezed to
    # (1, C)) to zeros; use a small random value so the broadcast-add path is
    # actually exercised by the correctness check.
    params = {"h": jax.random.normal(kh, (1, C), jnp.float32) * 0.1,
              "cells": []}
    for _ in range(3):
        key, k1, k2, k3, k4, k5, k6 = jax.random.split(key, 7)
        params["cells"].append({
            "we": jax.random.normal(k1, (C, E), jnp.float32) * 0.1,   # expand 1x1
            "be": jax.random.normal(k2, (1, E), jnp.float32) * 0.1,
            "wd": jax.random.normal(k3, (3, E), jnp.float32) * 0.1,   # depthwise k=3
            "bd": jax.random.normal(k4, (1, E), jnp.float32) * 0.1,
            "wp": jax.random.normal(k5, (E, C), jnp.float32) * 0.1,   # project 1x1
            "bp": jax.random.normal(k6, (1, C), jnp.float32) * 0.1,
        })
    return params


if __name__ == "__main__":
    key = jax.random.PRNGKey(0)
    kp, kz1, kz2, kz3 = jax.random.split(key, 4)

    params = init_params(kp)
    # encoder_outputs['z1'/'z2'/'z3'] in channels-last (B, L, C) layout.
    z1 = jax.random.normal(kz1, (BATCH, SEQ, EMBED), jnp.float32)
    z2 = jax.random.normal(kz2, (BATCH, SEQ, EMBED), jnp.float32)
    z3 = jax.random.normal(kz3, (BATCH, SEQ, EMBED), jnp.float32)

    out = segment_hierarchy_decoder(z1, z2, z3, params)
    out = jax.block_until_ready(out)

    ref = _ref_forward(z1, z2, z3, params)
    assert out.shape == (BATCH, SEQ, EMBED)
    # The neighbour gather is now exact (roll + 0/1 mask); the only remaining
    # divergence source is default-precision (bf16-pass) MXU matmuls on the
    # 1x1 convs, identical in kind to the reference's XLA dots -> tolerance
    # tightened from 2e-2 to 1e-3.
    assert jnp.allclose(out, ref, atol=1e-3, rtol=1e-3), "mismatch vs reference"

    print("KERNEL_OK")
</pallas_src>

<mosaic_0001>
module attributes {stable_mosaic.version = 11 : i64} {
  func.func @decoder_kernel(%arg0: memref<3x32x32xf32, #tpu.memory_space<vmem>>, %arg1: memref<3x32x64xf32, #tpu.memory_space<vmem>>, %arg2: memref<3x64x32xf32, #tpu.memory_space<vmem>>, %arg3: memref<3x5x64xf32, #tpu.memory_space<vmem>>, %arg4: memref<4x32xf32, #tpu.memory_space<vmem>>, %arg5: memref<32x32xf32, #tpu.memory_space<vmem>>) attributes {dimension_semantics = [], scalar_prefetch = 0 : i64, scratch_operands = 0 : i64, tpu.core_type = #tpu.core_type<tc>} {
    %0 = tpu.iota {dimensions = array<i32: 0>} : vector<32x64xi32>
    %c15_i32 = arith.constant 15 : i32
    %1 = vector.broadcast %c15_i32 : i32 to vector<32x64xi32>
    %2 = arith.andi %0, %1 : vector<32x64xi32>
    %c0_i32 = arith.constant 0 : i32
    %3 = vector.broadcast %c0_i32 : i32 to vector<32x64xi32>
    %4 = arith.cmpi ne, %2, %3 : vector<32x64xi32>
    %5 = arith.extui %4 : vector<32x64xi1> to vector<32x64xi32>
    %6 = arith.sitofp %5 : vector<32x64xi32> to vector<32x64xf32>
    %c15_i32_0 = arith.constant 15 : i32
    %7 = vector.broadcast %c15_i32_0 : i32 to vector<32x64xi32>
    %8 = arith.cmpi ne, %2, %7 : vector<32x64xi32>
    %9 = arith.extui %8 : vector<32x64xi1> to vector<32x64xi32>
    %10 = arith.sitofp %9 : vector<32x64xi32> to vector<32x64xf32>
    %c0 = arith.constant 0 : index
    %c0_1 = arith.constant 0 : index
    %11 = vector.load %arg4[%c0, %c0_1] : memref<4x32xf32, #tpu.memory_space<vmem>>, vector<4x32xf32>
    %12 = vector.extract_strided_slice %11 {offsets = [3, 0], sizes = [1, 32], strides = [1, 1]} : vector<4x32xf32> to vector<1x32xf32>
    %c0_2 = arith.constant 0 : index
    %c0_3 = arith.constant 0 : index
    %c0_4 = arith.constant 0 : index
    %13 = vector.load %arg0[%c0_2, %c0_3, %c0_4] : memref<3x32x32xf32, #tpu.memory_space<vmem>>, vector<1x32x32xf32>
    %14 = vector.shape_cast %13 : vector<1x32x32xf32> to vector<32x32xf32>
    %15 = vector.broadcast %12 : vector<1x32xf32> to vector<32x32xf32>
    %16 = arith.addf %14, %15 : vector<32x32xf32>
    %c0_5 = arith.constant 0 : index
    %c0_6 = arith.constant 0 : index
    %c0_7 = arith.constant 0 : index
    %17 = vector.load %arg1[%c0_5, %c0_6, %c0_7] : memref<3x32x64xf32, #tpu.memory_space<vmem>>, vector<1x32x64xf32>
    %18 = vector.shape_cast %17 : vector<1x32x64xf32> to vector<32x64xf32>
    %c0_8 = arith.constant 0 : index
    %c0_9 = arith.constant 0 : index
    %c0_10 = arith.constant 0 : index
    %19 = vector.load %arg2[%c0_8, %c0_9, %c0_10] : memref<3x64x32xf32, #tpu.memory_space<vmem>>, vector<1x64x32xf32>
    %20 = vector.shape_cast %19 : vector<1x64x32xf32> to vector<64x32xf32>
    %c0_11 = arith.constant 0 : index
    %c0_12 = arith.constant 0 : index
    %c0_13 = arith.constant 0 : index
    %21 = vector.load %arg3[%c0_11, %c0_12, %c0_13] : memref<3x5x64xf32, #tpu.memory_space<vmem>>, vector<1x5x64xf32>
    %22 = vector.shape_cast %21 : vector<1x5x64xf32> to vector<5x64xf32>
    %23 = vector.extract_strided_slice %11 {offsets = [0, 0], sizes = [1, 32], strides = [1, 1]} : vector<4x32xf32> to vector<1x32xf32>
    %cst = arith.constant dense<0.000000e+00> : vector<32x64xf32>
    %24 = tpu.matmul %16, %18, %cst {dimension_numbers = #tpu.dot_dimension_numbers<[1], [0], [0], [1], [0, 0, 1, 1], [], []>} : vector<32x32xf32>, vector<32x64xf32>, vector<32x64xf32> -> vector<32x64xf32>
    %25 = vector.extract_strided_slice %22 {offsets = [0, 0], sizes = [1, 64], strides = [1, 1]} : vector<5x64xf32> to vector<1x64xf32>
    %26 = vector.broadcast %25 : vector<1x64xf32> to vector<32x64xf32>
    %27 = arith.addf %24, %26 : vector<32x64xf32>
    %cst_14 = arith.constant 0.000000e+00 : f32
    %cst_15 = arith.constant 6.000000e+00 : f32
    %28 = vector.broadcast %cst_14 : f32 to vector<32x64xf32>
    %29 = arith.maximumf %28, %27 : vector<32x64xf32>
    %30 = vector.broadcast %cst_15 : f32 to vector<32x64xf32>
    %31 = arith.minimumf %30, %29 : vector<32x64xf32>
    %c1_i32 = arith.constant 1 : i32
    %32 = tpu.dynamic_rotate %31 by %c1_i32 dim 0 : vector<32x64xf32>, i32 -> vector<32x64xf32>
    %33 = arith.mulf %32, %6 : vector<32x64xf32>
    %c31_i32 = arith.constant 31 : i32
    %34 = tpu.dynamic_rotate %31 by %c31_i32 dim 0 : vector<32x64xf32>, i32 -> vector<32x64xf32>
    %35 = arith.mulf %34, %10 : vector<32x64xf32>
    %36 = vector.extract_strided_slice %22 {offsets = [1, 0], sizes = [1, 64], strides = [1, 1]} : vector<5x64xf32> to vector<1x64xf32>
    %37 = vector.broadcast %36 : vector<1x64xf32> to vector<32x64xf32>
    %38 = arith.mulf %33, %37 : vector<32x64xf32>
    %39 = vector.extract_strided_slice %22 {offsets = [2, 0], sizes = [1, 64], strides = [1, 1]} : vector<5x64xf32> to vector<1x64xf32>
    %40 = vector.broadcast %39 : vector<1x64xf32> to vector<32x64xf32>
    %41 = arith.mulf %31, %40 : vector<32x64xf32>
    %42 = arith.addf %38, %41 : vector<32x64xf32>
    %43 = vector.extract_strided_slice %22 {offsets = [3, 0], sizes = [1, 64], strides = [1, 1]} : vector<5x64xf32> to vector<1x64xf32>
    %44 = vector.broadcast %43 : vector<1x64xf32> to vector<32x64xf32>
    %45 = arith.mulf %35, %44 : vector<32x64xf32>
    %46 = arith.addf %42, %45 : vector<32x64xf32>
    %47 = vector.extract_strided_slice %22 {offsets = [4, 0], sizes = [1, 64], strides = [1, 1]} : vector<5x64xf32> to vector<1x64xf32>
    %48 = vector.broadcast %47 : vector<1x64xf32> to vector<32x64xf32>
    %49 = arith.addf %46, %48 : vector<32x64xf32>
    %cst_16 = arith.constant 0.000000e+00 : f32
    %cst_17 = arith.constant 6.000000e+00 : f32
    %50 = vector.broadcast %cst_16 : f32 to vector<32x64xf32>
    %51 = arith.maximumf %50, %49 : vector<32x64xf32>
    %52 = vector.broadcast %cst_17 : f32 to vector<32x64xf32>
    %53 = arith.minimumf %52, %51 : vector<32x64xf32>
    %cst_18 = arith.constant dense<0.000000e+00> : vector<32x32xf32>
    %54 = tpu.matmul %53, %20, %cst_18 {dimension_numbers = #tpu.dot_dimension_numbers<[1], [0], [0], [1], [0, 0, 1, 1], [], []>} : vector<32x64xf32>, vector<64x32xf32>, vector<32x32xf32> -> vector<32x32xf32>
    %55 = arith.addf %16, %54 : vector<32x32xf32>
    %56 = vector.broadcast %23 : vector<1x32xf32> to vector<32x32xf32>
    %57 = arith.addf %55, %56 : vector<32x32xf32>
    %c1 = arith.constant 1 : index
    %c0_19 = arith.constant 0 : index
    %c0_20 = arith.constant 0 : index
    %58 = vector.load %arg0[%c1, %c0_19, %c0_20] : memref<3x32x32xf32, #tpu.memory_space<vmem>>, vector<1x32x32xf32>
    %59 = vector.shape_cast %58 : vector<1x32x32xf32> to vector<32x32xf32>
    %60 = arith.addf %57, %59 : vector<32x32xf32>
    %c1_21 = arith.constant 1 : index
    %c0_22 = arith.constant 0 : index
    %c0_23 = arith.constant 0 : index
    %61 = vector.load %arg1[%c1_21, %c0_22, %c0_23] : memref<3x32x64xf32, #tpu.memory_space<vmem>>, vector<1x32x64xf32>
    %62 = vector.shape_cast %61 : vector<1x32x64xf32> to vector<32x64xf32>
    %c1_24 = arith.constant 1 : index
    %c0_25 = arith.constant 0 : index
    %c0_26 = arith.constant 0 : index
    %63 = vector.load %arg2[%c1_24, %c0_25, %c0_26] : memref<3x64x32xf32, #tpu.memory_space<vmem>>, vector<1x64x32xf32>
    %64 = vector.shape_cast %63 : vector<1x64x32xf32> to vector<64x32xf32>
    %c1_27 = arith.constant 1 : index
    %c0_28 = arith.constant 0 : index
    %c0_29 = arith.constant 0 : index
    %65 = vector.load %arg3[%c1_27, %c0_28, %c0_29] : memref<3x5x64xf32, #tpu.memory_space<vmem>>, vector<1x5x64xf32>
    %66 = vector.shape_cast %65 : vector<1x5x64xf32> to vector<5x64xf32>
    %67 = vector.extract_strided_slice %11 {offsets = [1, 0], sizes = [1, 32], strides = [1, 1]} : vector<4x32xf32> to vector<1x32xf32>
    %cst_30 = arith.constant dense<0.000000e+00> : vector<32x64xf32>
    %68 = tpu.matmul %60, %62, %cst_30 {dimension_numbers = #tpu.dot_dimension_numbers<[1], [0], [0], [1], [0, 0, 1, 1], [], []>} : vector<32x32xf32>, vector<32x64xf32>, vector<32x64xf32> -> vector<32x64xf32>
    %69 = vector.extract_strided_slice %66 {offsets = [0, 0], sizes = [1, 64], strides = [1, 1]} : vector<5x64xf32> to vector<1x64xf32>
    %70 = vector.broadcast %69 : vector<1x64xf32> to vector<32x64xf32>
    %71 = arith.addf %68, %70 : vector<32x64xf32>
    %cst_31 = arith.constant 0.000000e+00 : f32
    %cst_32 = arith.constant 6.000000e+00 : f32
    %72 = vector.broadcast %cst_31 : f32 to vector<32x64xf32>
    %73 = arith.maximumf %72, %71 : vector<32x64xf32>
    %74 = vector.broadcast %cst_32 : f32 to vector<32x64xf32>
    %75 = arith.minimumf %74, %73 : vector<32x64xf32>
    %c1_i32_33 = arith.constant 1 : i32
    %76 = tpu.dynamic_rotate %75 by %c1_i32_33 dim 0 : vector<32x64xf32>, i32 -> vector<32x64xf32>
    %77 = arith.mulf %76, %6 : vector<32x64xf32>
    %c31_i32_34 = arith.constant 31 : i32
    %78 = tpu.dynamic_rotate %75 by %c31_i32_34 dim 0 : vector<32x64xf32>, i32 -> vector<32x64xf32>
    %79 = arith.mulf %78, %10 : vector<32x64xf32>
    %80 = vector.extract_strided_slice %66 {offsets = [1, 0], sizes = [1, 64], strides = [1, 1]} : vector<5x64xf32> to vector<1x64xf32>
    %81 = vector.broadcast %80 : vector<1x64xf32> to vector<32x64xf32>
    %82 = arith.mulf %77, %81 : vector<32x64xf32>
    %83 = vector.extract_strided_slice %66 {offsets = [2, 0], sizes = [1, 64], strides = [1, 1]} : vector<5x64xf32> to vector<1x64xf32>
    %84 = vector.broadcast %83 : vector<1x64xf32> to vector<32x64xf32>
    %85 = arith.mulf %75, %84 : vector<32x64xf32>
    %86 = arith.addf %82, %85 : vector<32x64xf32>
    %87 = vector.extract_strided_slice %66 {offsets = [3, 0], sizes = [1, 64], strides = [1, 1]} : vector<5x64xf32> to vector<1x64xf32>
    %88 = vector.broadcast %87 : vector<1x64xf32> to vector<32x64xf32>
    %89 = arith.mulf %79, %88 : vector<32x64xf32>
    %90 = arith.addf %86, %89 : vector<32x64xf32>
    %91 = vector.extract_strided_slice %66 {offsets = [4, 0], sizes = [1, 64], strides = [1, 1]} : vector<5x64xf32> to vector<1x64xf32>
    %92 = vector.broadcast %91 : vector<1x64xf32> to vector<32x64xf32>
    %93 = arith.addf %90, %92 : vector<32x64xf32>
    %cst_35 = arith.constant 0.000000e+00 : f32
    %cst_36 = arith.constant 6.000000e+00 : f32
    %94 = vector.broadcast %cst_35 : f32 to vector<32x64xf32>
    %95 = arith.maximumf %94, %93 : vector<32x64xf32>
    %96 = vector.broadcast %cst_36 : f32 to vector<32x64xf32>
    %97 = arith.minimumf %96, %95 : vector<32x64xf32>
    %cst_37 = arith.constant dense<0.000000e+00> : vector<32x32xf32>
    %98 = tpu.matmul %97, %64, %cst_37 {dimension_numbers = #tpu.dot_dimension_numbers<[1], [0], [0], [1], [0, 0, 1, 1], [], []>} : vector<32x64xf32>, vector<64x32xf32>, vector<32x32xf32> -> vector<32x32xf32>
    %99 = arith.addf %60, %98 : vector<32x32xf32>
    %100 = vector.broadcast %67 : vector<1x32xf32> to vector<32x32xf32>
    %101 = arith.addf %99, %100 : vector<32x32xf32>
    %c2 = arith.constant 2 : index
    %c0_38 = arith.constant 0 : index
    %c0_39 = arith.constant 0 : index
    %102 = vector.load %arg0[%c2, %c0_38, %c0_39] : memref<3x32x32xf32, #tpu.memory_space<vmem>>, vector<1x32x32xf32>
    %103 = vector.shape_cast %102 : vector<1x32x32xf32> to vector<32x32xf32>
    %104 = arith.addf %101, %103 : vector<32x32xf32>
    %c2_40 = arith.constant 2 : index
    %c0_41 = arith.constant 0 : index
    %c0_42 = arith.constant 0 : index
    %105 = vector.load %arg1[%c2_40, %c0_41, %c0_42] : memref<3x32x64xf32, #tpu.memory_space<vmem>>, vector<1x32x64xf32>
    %106 = vector.shape_cast %105 : vector<1x32x64xf32> to vector<32x64xf32>
    %c2_43 = arith.constant 2 : index
    %c0_44 = arith.constant 0 : index
    %c0_45 = arith.constant 0 : index
    %107 = vector.load %arg2[%c2_43, %c0_44, %c0_45] : memref<3x64x32xf32, #tpu.memory_space<vmem>>, vector<1x64x32xf32>
    %108 = vector.shape_cast %107 : vector<1x64x32xf32> to vector<64x32xf32>
    %c2_46 = arith.constant 2 : index
    %c0_47 = arith.constant 0 : index
    %c0_48 = arith.constant 0 : index
    %109 = vector.load %arg3[%c2_46, %c0_47, %c0_48] : memref<3x5x64xf32, #tpu.memory_space<vmem>>, vector<1x5x64xf32>
    %110 = vector.shape_cast %109 : vector<1x5x64xf32> to vector<5x64xf32>
    %111 = vector.extract_strided_slice %11 {offsets = [2, 0], sizes = [1, 32], strides = [1, 1]} : vector<4x32xf32> to vector<1x32xf32>
    %cst_49 = arith.constant dense<0.000000e+00> : vector<32x64xf32>
    %112 = tpu.matmul %104, %106, %cst_49 {dimension_numbers = #tpu.dot_dimension_numbers<[1], [0], [0], [1], [0, 0, 1, 1], [], []>} : vector<32x32xf32>, vector<32x64xf32>, vector<32x64xf32> -> vector<32x64xf32>
    %113 = vector.extract_strided_slice %110 {offsets = [0, 0], sizes = [1, 64], strides = [1, 1]} : vector<5x64xf32> to vector<1x64xf32>
    %114 = vector.broadcast %113 : vector<1x64xf32> to vector<32x64xf32>
    %115 = arith.addf %112, %114 : vector<32x64xf32>
    %cst_50 = arith.constant 0.000000e+00 : f32
    %cst_51 = arith.constant 6.000000e+00 : f32
    %116 = vector.broadcast %cst_50 : f32 to vector<32x64xf32>
    %117 = arith.maximumf %116, %115 : vector<32x64xf32>
    %118 = vector.broadcast %cst_51 : f32 to vector<32x64xf32>
    %119 = arith.minimumf %118, %117 : vector<32x64xf32>
    %c1_i32_52 = arith.constant 1 : i32
    %120 = tpu.dynamic_rotate %119 by %c1_i32_52 dim 0 : vector<32x64xf32>, i32 -> vector<32x64xf32>
    %121 = arith.mulf %120, %6 : vector<32x64xf32>
    %c31_i32_53 = arith.constant 31 : i32
    %122 = tpu.dynamic_rotate %119 by %c31_i32_53 dim 0 : vector<32x64xf32>, i32 -> vector<32x64xf32>
    %123 = arith.mulf %122, %10 : vector<32x64xf32>
    %124 = vector.extract_strided_slice %110 {offsets = [1, 0], sizes = [1, 64], strides = [1, 1]} : vector<5x64xf32> to vector<1x64xf32>
    %125 = vector.broadcast %124 : vector<1x64xf32> to vector<32x64xf32>
    %126 = arith.mulf %121, %125 : vector<32x64xf32>
    %127 = vector.extract_strided_slice %110 {offsets = [2, 0], sizes = [1, 64], strides = [1, 1]} : vector<5x64xf32> to vector<1x64xf32>
    %128 = vector.broadcast %127 : vector<1x64xf32> to vector<32x64xf32>
    %129 = arith.mulf %119, %128 : vector<32x64xf32>
    %130 = arith.addf %126, %129 : vector<32x64xf32>
    %131 = vector.extract_strided_slice %110 {offsets = [3, 0], sizes = [1, 64], strides = [1, 1]} : vector<5x64xf32> to vector<1x64xf32>
    %132 = vector.broadcast %131 : vector<1x64xf32> to vector<32x64xf32>
    %133 = arith.mulf %123, %132 : vector<32x64xf32>
    %134 = arith.addf %130, %133 : vector<32x64xf32>
    %135 = vector.extract_strided_slice %110 {offsets = [4, 0], sizes = [1, 64], strides = [1, 1]} : vector<5x64xf32> to vector<1x64xf32>
    %136 = vector.broadcast %135 : vector<1x64xf32> to vector<32x64xf32>
    %137 = arith.addf %134, %136 : vector<32x64xf32>
    %cst_54 = arith.constant 0.000000e+00 : f32
    %cst_55 = arith.constant 6.000000e+00 : f32
    %138 = vector.broadcast %cst_54 : f32 to vector<32x64xf32>
    %139 = arith.maximumf %138, %137 : vector<32x64xf32>
    %140 = vector.broadcast %cst_55 : f32 to vector<32x64xf32>
    %141 = arith.minimumf %140, %139 : vector<32x64xf32>
    %cst_56 = arith.constant dense<0.000000e+00> : vector<32x32xf32>
    %142 = tpu.matmul %141, %108, %cst_56 {dimension_numbers = #tpu.dot_dimension_numbers<[1], [0], [0], [1], [0, 0, 1, 1], [], []>} : vector<32x64xf32>, vector<64x32xf32>, vector<32x32xf32> -> vector<32x32xf32>
    %143 = arith.addf %104, %142 : vector<32x32xf32>
    %144 = vector.broadcast %111 : vector<1x32xf32> to vector<32x32xf32>
    %145 = arith.addf %143, %144 : vector<32x32xf32>
    %c0_57 = arith.constant 0 : index
    %c0_58 = arith.constant 0 : index
    %146 = vector.load %arg5[%c0_57, %c0_58] : memref<32x32xf32, #tpu.memory_space<vmem>>, vector<32x32xf32>
    tpu.vector_store %arg5[%c0_57, %c0_58], %145 {strides = array<i32>} : memref<32x32xf32, #tpu.memory_space<vmem>>, vector<32x32xf32>,
    return
  }
}

</mosaic_0001>

<bundles_post_ra>
// kernel: tpu_custom_call.1
= control target key start
LH: loop header
LB: loop body
LE: loop exit
PB: predicated region body
PF: predicated region fallthrough
CT: control target
= control target key end

     0   :  { %v21_v3 = vlaneseq  ;;  %s1755_s0 = inlined_call_operand.vmem [shape: f32[3,32,32], index: 0, kind: input, shape index: {}]   ;;  %s1756_s1 = inlined_call_operand.vmem [shape: f32[3,32,64], index: 1, kind: input, shape index: {}]   ;;  %s1757_s2 = inlined_call_operand.vmem [shape: f32[3,64,32], index: 2, kind: input, shape index: {}]   ;;  %s1758_s3 = inlined_call_operand.vmem [shape: f32[3,5,64], index: 3, kind: input, shape index: {}]   ;;  %s1759_s4 = inlined_call_operand.vmem [shape: f32[4,32], index: 4, kind: input, shape index: {}]   ;;  %s1760_s5 = inlined_call_operand.hbm [shape: f32[32,32], index: 5, kind: output, shape index: {}]  }
   0x1   :  { %v67_v0 = vld [vmem:[%s1756_s1] sm:$0xff]  ;;  %v68_v1 = vld [vmem:[%s1756_s1 + $0x8] sm:$0xff]  ;;  %v69_v2 = vld [vmem:[%s1756_s1 + $0x10] sm:$0xff] }
   0x2   :  { %v1254_v4 = vpack.c.bf16 %v68_v1, %v67_v0  ;;  %v70_v5 = vld [vmem:[%s1756_s1 + $0x18] sm:$0xff]  ;;  %v1400_v7 = vshrl.u32 %v21_v3, 7  ;;  %v1405_v8 = vld [vmem:[%s1759_s4] sm:$0xf] }
   0x3   :  { %v1258_v6 = vpack.c.bf16 %v70_v5, %v69_v2 }
   0x4   :  { %1255 = vmatprep.subr.bf16.mxu0 %v1254_v4 }
   0x5   :  { %10 = vsyncpa [#allocation3], 0  ;;  %1257 = vmatpush3.bf16.msra.mxu0 %v1254_v4  ;;  %v1408_v9 = vsub.s32 3, %v1400_v7  ;;  %v55_v10 = vld [vmem:[%s1755_s0] sm:$0xff]  ;;  %v56_v11 = vld [vmem:[%s1755_s0 + $0x8] sm:$0xff]  ;;  %vm84_vm0 = vcmask 261120  }
   0x6   :  { %1259 = vmatprep.subr.bf16.mxu0 %v1258_v6  ;;  %v57_v12 = vld [vmem:[%s1755_s0 + $0x10] sm:$0xff]  ;;  %v58_v17 = vld [vmem:[%s1755_s0 + $0x18] sm:$0xff]  ;;  %v71_v19 = vld [vmem:[%s1757_s2] sm:$0xff]  ;;  %v1465_v31 = vsub.s32 0, %v1400_v7  ;;  %v25_v34 = vadd.s32 24, %v1400_v7  ;;  %v1476_v35 = vsub.s32 2, %v1400_v7 }
   0x7   :  { %v62_v13 = vrot.slane %v1405_v8, %v1408_v9  ;;  %v72_v20 = vld [vmem:[%s1757_s2 + $0x8] sm:$0xff]  ;;  %v73_v22 = vld [vmem:[%s1757_s2 + $0x10] sm:$0xff]  ;;  %v74_v23 = vld [vmem:[%s1757_s2 + $0x18] sm:$0xff]  ;;  %v24_v36 = vadd.s32 16, %v1400_v7  ;;  %v1480_v38 = vsub.s32 1, %v1400_v7  ;;  %v23_v41 = vadd.s32 8, %v1400_v7 }
   0x8   :  { %v1262_v21 = vpack.c.bf16 %v72_v20, %v71_v19  ;;  %v1266_v24 = vpack.c.bf16 %v74_v23, %v73_v22  ;;  %v75_v25 = vld [vmem:[%s1757_s2 + $0x20] sm:$0xff]  ;;  %v76_v26 = vld [vmem:[%s1757_s2 + $0x28] sm:$0xff]  ;;  %v77_v28 = vld [vmem:[%s1757_s2 + $0x30] sm:$0xff]  ;;  %v29_v43 = vand.u32 15, %v25_v34  ;;  %vm194_vm1 = vcmp.lt.s32.totalorder %v1400_v7, 1 }
   0x9   :  { %1261 = vmatpush3.bf16.msra.mxu0 %v1258_v6  ;;  %v1421_v14 = vadd.f32 %v62_v13, %v55_v10  ;;  %v1423_v15 = vadd.f32 %v62_v13, %v56_v11  ;;  %v1425_v16 = vadd.f32 %v62_v13, %v57_v12  ;;  %v1434_v18 = vadd.f32 %v62_v13, %v58_v17  ;;  %v78_v29 = vld [vmem:[%s1757_s2 + $0x38] sm:$0xff]  ;;  %v1470_v32 = vld [vmem:[%s1758_s3] sm:$0x1f] }
   0xa   :  { %1263 = vmatprep.subr.bf16.mxu1 %v1262_v21  ;;  %v1270_v27 = vpack.c.bf16 %v76_v26, %v75_v25  ;;  %v1274_v30 = vpack.c.bf16 %v78_v29, %v77_v28  ;;  %v83_v33 = vrot.slane %v1470_v32, %v1465_v31  ;;  %v227_v45 = vrot.slane %v1470_v32, %v1476_v35 }
   0xb   :  { %1154 = vmatprep.mubr.msk.f32.mxu0 %vm84_vm0, %v1421_v14  ;;  %1265 = vmatpush3.bf16.msra.mxu1 %v1262_v21  ;;  %v28_v46 = vand.u32 15, %v24_v36  ;;  %v219_v48 = vrot.slane %v1470_v32, %v1480_v38  ;;  %vm207_vm2 = vcmp.lt.s32.totalorder %v1400_v7, 7  ;;  %v27_v52 = vand.u32 15, %v23_v41 }
   0xc   :  { %1155 = vmatmul.mubr.msk.f32.vlgmr.msra.gmra.mrb[0].mxu0 %vm84_vm0, %v1423_v15  ;;  %1267 = vmatprep.subr.bf16.mxu1 %v1266_v24  ;;  %v26_v54 = vand.u32 15, %v1400_v7  ;;  %vm45_vm3 = vcmp.ne.s32.totalorder %v29_v43, 15  ;;  %v239_v63 = vrot.slane %v1470_v32, %v1408_v9  ;;  %v1354_v0 = vmov 0.0  }
   0xd   :  { %1157 = vmatprep.mubr.msk.f32.mxu0 %vm84_vm0, %v1425_v16  ;;  %vm32_vm4 = vcmp.ne.s32.totalorder %v28_v46, 0  ;;  %v1492_v1 = vsel %vm45_vm3, 1.0, %v1354_v0  ;;  %vm43_vm5 = vcmp.ne.s32.totalorder %v27_v52, 15  ;;  %vm264_vm7 = vcmask 523264  }
   0xe   :  { %vm30_vm6 = vcmp.ne.s32.totalorder %v26_v54, 0  ;;  %v1496_v4 = vsel %vm32_vm4, 1.0, %v1354_v0  ;;  %v1500_v17 = vsel %vm43_vm5, 1.0, %v1354_v0 }
   0xf   :  { %1269 = vmatpush3.bf16.msra.mxu1 %v1266_v24  ;;  %v1502_v21 = vsel %vm30_vm6, 1.0, %v1354_v0  ;;  %v1509_v24 = vsub.s32 4, %v1400_v7 }
  0x10   :  { %1158 = vmatmul.mubr.msk.f32.gmra.mrb[2].mxu0 %vm84_vm0, %v1434_v18  ;;  %1271 = vmatprep.subr.bf16.mxu1 %v1270_v27 }
  0x13   :  { %1273 = vmatpush3.bf16.msra.mxu1 %v1270_v27 }
  0x14   :  { %1275 = vmatprep.subr.bf16.mxu1 %v1274_v30 }
  0x17   :  { %1277 = vmatpush3.bf16.msra.mxu1 %v1274_v30 }
  0xdf   :  { %v1156_v37 = vpop.f32.mrb[0].mxu0 }
  0xe0   :  { %v169_v39 = vadd.f32 %v1156_v37, %v83_v33  ;;  %v163_v40 = vpop.f32.mrb[1].mxu0 }
  0xe1   :  { %v164_v42 = vadd.f32 %v163_v40, %v83_v33 }
  0xe2   :  { %v183_v44 = vmax.f32 %v169_v39, 0.0 }
  0xe3   :  { %v182_v47 = vmax.f32 %v164_v42, 0.0  ;;  %v1159_v49 = vpop.f32.mrb[2].mxu0 }
  0xe4   :  { %v187_v50 = vmin.f32 %v183_v44, 6.0  ;;  %v179_v51 = vadd.f32 %v1159_v49, %v83_v33  ;;  %v173_v53 = vpop.f32.mrb[3].mxu0 }
  0xe5   :  { %v186_v55 = vmin.f32 %v182_v47, 6.0  ;;  %v174_v56 = vadd.f32 %v173_v53, %v83_v33  ;;  %v251_v47 = vrot.slane %v1470_v32, %v1509_v24 }
  0xe6   :  { %v191_v57 = vrot.slane %v187_v50, 7  ;;  %v204_v58 = vrot.slane %v187_v50, 1  ;;  %v185_v59 = vmax.f32 %v179_v51, 0.0  ;;  %v229_v10 = vmul.f32 %v227_v45, %v187_v50 }
  0xe7   :  { %v190_v60 = vrot.slane %v186_v55, 7  ;;  %v203_v61 = vrot.slane %v186_v55, 1  ;;  %v184_v62 = vmax.f32 %v174_v56, 0.0  ;;  %v228_v44 = vmul.f32 %v227_v45, %v186_v55 }
  0xe8   :  { %v189_v2 = vmin.f32 %v185_v59, 6.0 }
  0xe9   :  { %v197_v3 = vsel %vm194_vm1, %v190_v60, %v191_v57  ;;  %v188_v5 = vmin.f32 %v184_v62, 6.0  ;;  %v210_v6 = vsel %vm207_vm2, %v203_v61, %v204_v58 }
  0xea   :  { %v221_v11 = vmul.f32 %v219_v48, %v197_v3  ;;  %v193_v12 = vrot.slane %v189_v2, 7  ;;  %v206_v13 = vrot.slane %v189_v2, 1  ;;  %v231_v30 = vmul.f32 %v227_v45, %v189_v2 }
  0xeb   :  { %v192_v19 = vrot.slane %v188_v5, 7  ;;  %v205_v20 = vrot.slane %v188_v5, 1  ;;  %v230_v42 = vmul.f32 %v227_v45, %v188_v5  ;;  %v240_v54 = vmul.f32 %v239_v63, %v210_v6  ;;  %v1040_v5 = vld [vmem:[%s1756_s1 + $0x20] sm:$0xff]  ;;  %v1041_v6 = vld [vmem:[%s1756_s1 + $0x28] sm:$0xff] }
  0xec   :  { %v198_v22 = vsel %vm194_vm1, %v193_v12, %v190_v60  ;;  %v211_v23 = vsel %vm207_vm2, %v206_v13, %v203_v61  ;;  %v233_v25 = vadd.f32 %v229_v10, %v221_v11  ;;  %v1278_v10 = vpack.c.bf16 %v1041_v6, %v1040_v5  ;;  %v1042_v11 = vld [vmem:[%s1756_s1 + $0x30] sm:$0xff] }
  0xed   :  { %v215_v26 = vmul.f32 %v1492_v1, %v211_v23  ;;  %v195_v27 = vsel %vm194_vm1, %v192_v19, %v193_v12  ;;  %v196_v28 = vsel %vm194_vm1, %v191_v57, %v192_v19  ;;  %v208_v29 = vsel %vm207_vm2, %v205_v20, %v206_v13  ;;  %v1043_v12 = vld [vmem:[%s1756_s1 + $0x38] sm:$0xff] }
  0xee   :  { %v201_v33 = vmul.f32 %v1496_v4, %v196_v28  ;;  %v209_v34 = vsel %vm207_vm2, %v204_v58, %v205_v20  ;;  %v223_v36 = vmul.f32 %v219_v48, %v195_v27  ;;  %v199_v39 = vmul.f32 %v1502_v21, %v198_v22  ;;  %1279 = vmatprep.subr.bf16.mxu0 %v1278_v10  ;;  %v1036_v27 = vld [vmem:[%s1755_s0 + $0x20] sm:$0xff]  ;;  %v1037_v28 = vld [vmem:[%s1755_s0 + $0x28] sm:$0xff] }
  0xef   :  { %v213_v37 = vmul.f32 %v1500_v17, %v209_v34  ;;  %v243_v40 = vmul.f32 %v239_v63, %v215_v26  ;;  %v242_v51 = vmul.f32 %v239_v63, %v208_v29  ;;  %1281 = vmatpush3.bf16.msra.mxu0 %v1278_v10  ;;  %v1282_v13 = vpack.c.bf16 %v1043_v12, %v1042_v11 }
  0xf0   :  { %v222_v41 = vmul.f32 %v219_v48, %v201_v33  ;;  %v235_v43 = vadd.f32 %v231_v30, %v223_v36  ;;  %v220_v46 = vmul.f32 %v219_v48, %v199_v39  ;;  %v369_v19 = vrot.slane %v1405_v8, %v1465_v31  ;;  %v1038_v39 = vld [vmem:[%s1755_s0 + $0x30] sm:$0xff] }
  0xf1   :  { %v241_v49 = vmul.f32 %v239_v63, %v213_v37  ;;  %1283 = vmatprep.subr.bf16.mxu0 %v1282_v13 }
  0xf2   :  { %v234_v50 = vadd.f32 %v230_v42, %v222_v41  ;;  %v247_v52 = vadd.f32 %v243_v40, %v235_v43  ;;  %v232_v53 = vadd.f32 %v228_v44, %v220_v46  ;;  %v1039_v40 = vld [vmem:[%s1755_s0 + $0x38] sm:$0xff]  ;;  %v1044_v42 = vld [vmem:[%s1757_s2 + $0x40] sm:$0xff]  ;;  %v1045_v43 = vld [vmem:[%s1757_s2 + $0x48] sm:$0xff] }
  0xf3   :  { %v245_v56 = vadd.f32 %v241_v49, %v233_v25  ;;  %1285 = vmatpush3.bf16.msra.mxu0 %v1282_v13  ;;  %v1286_v44 = vpack.c.bf16 %v1045_v43, %v1044_v42  ;;  %v1046_v46 = vld [vmem:[%s1757_s2 + $0x50] sm:$0xff] }
  0xf4   :  { %v246_v57 = vadd.f32 %v242_v51, %v234_v50  ;;  %v244_v58 = vadd.f32 %v240_v54, %v232_v53  ;;  %v255_v2 = vadd.f32 %v251_v47, %v247_v52  ;;  %v1048_v50 = vld [vmem:[%s1757_s2 + $0x60] sm:$0xff]  ;;  %v1049_v51 = vld [vmem:[%s1757_s2 + $0x68] sm:$0xff]  ;;  %v1050_v53 = vld [vmem:[%s1757_s2 + $0x70] sm:$0xff] }
  0xf5   :  { %v253_v59 = vadd.f32 %v251_v47, %v245_v56  ;;  %1287 = vmatprep.subr.bf16.mxu0 %v1286_v44  ;;  %v1294_v52 = vpack.c.bf16 %v1049_v51, %v1048_v50  ;;  %v1051_v54 = vld [vmem:[%s1757_s2 + $0x78] sm:$0xff] }
  0xf6   :  { %v254_v60 = vadd.f32 %v251_v47, %v246_v57  ;;  %v252_v61 = vadd.f32 %v251_v47, %v244_v58  ;;  %v259_v3 = vmax.f32 %v255_v2, 0.0  ;;  %v1047_v47 = vld [vmem:[%s1757_s2 + $0x58] sm:$0xff]  ;;  %v1298_v56 = vpack.c.bf16 %v1051_v54, %v1050_v53  ;;  %v1052_v57 = vld [vmem:[%s1758_s3 + $0x8] sm:$0x1f] }
  0xf7   :  { %v257_v62 = vmax.f32 %v253_v59, 0.0  ;;  %v1290_v49 = vpack.c.bf16 %v1047_v47, %v1046_v46  ;;  %v402_v58 = vrot.slane %v1052_v57, %v1465_v31  ;;  %v535_v11 = vrot.slane %v1052_v57, %v1480_v38 }
  0xf8   :  { %v258_v0 = vmax.f32 %v254_v60, 0.0  ;;  %v256_v45 = vmax.f32 %v252_v61, 0.0  ;;  %v263_v63 = vmin.f32 %v259_v3, 6.0  ;;  %v543_v3 = vrot.slane %v1052_v57, %v1476_v35 }
  0xf9   :  { %v261_v32 = vmin.f32 %v257_v62, 6.0 }
  0xfa   :  { %v260_v48 = vmin.f32 %v256_v45, 6.0  ;;  %v262_v55 = vmin.f32 %v258_v0, 6.0 }
  0xfc   :  { %1176 = vmatprep.mubr.msk.f32.mxu1 %vm264_vm7, %v260_v48 }
  0xfd   :  { %1177 = vmatmul.mubr.msk.f32.vlgmr.msra.gmra.mrb[0].mxu1 %vm264_vm7, %v261_v32 }
  0xfe   :  { %1179 = vmatprep.mubr.msk.f32.mxu1 %vm264_vm7, %v262_v55 }
 0x101   :  { %1180 = vmatmul.mubr.msk.f32.gmra.mrb[2].mxu1 %vm264_vm7, %v263_v63 }
 0x1d0   :  { %v1178_v20 = vpop.f32.mrb[0].mxu1 }
 0x1d1   :  { %v363_v22 = vadd.f32 %v1178_v20, %v1423_v15  ;;  %v343_v23 = vpop.f32.mrb[1].mxu1 }
 0x1d2   :  { %v362_v25 = vadd.f32 %v343_v23, %v1421_v14 }
 0x1d3   :  { %v371_v26 = vadd.f32 %v369_v19, %v363_v22 }
 0x1d4   :  { %v370_v29 = vadd.f32 %v369_v19, %v362_v25  ;;  %v1181_v30 = vpop.f32.mrb[2].mxu1 }
 0x1d5   :  { %v365_v33 = vadd.f32 %v1181_v30, %v1434_v18  ;;  %v353_v34 = vpop.f32.mrb[3].mxu1  ;;  %v1555_v37 = vadd.f32 %v1037_v28, %v371_v26 }
 0x1d6   :  { %v1552_v36 = vadd.f32 %v1036_v27, %v370_v29  ;;  %v364_v15 = vadd.f32 %v353_v34, %v1425_v16 }
 0x1d7   :  { %v373_v14 = vadd.f32 %v369_v19, %v365_v33  ;;  %v555_v33 = vrot.slane %v1052_v57, %v1408_v9 }
 0x1d8   :  { %v372_v41 = vadd.f32 %v369_v19, %v364_v15  ;;  %1190 = vmatprep.mubr.msk.f32.mxu0 %vm84_vm0, %v1552_v36 }
 0x1d9   :  { %1191 = vmatmul.mubr.msk.f32.vlgmr.msra.gmra.mrb[4].mxu0 %vm84_vm0, %v1555_v37  ;;  %v1569_v16 = vadd.f32 %v1039_v40, %v373_v14 }
 0x1da   :  { %v1567_v18 = vadd.f32 %v1038_v39, %v372_v41  ;;  %1289 = vmatpush3.bf16.msra.mxu0 %v1286_v44 }
 0x1db   :  { %1291 = vmatprep.subr.bf16.mxu0 %v1290_v49 }
 0x1dc   :  { %1193 = vmatprep.mubr.msk.f32.mxu0 %vm84_vm0, %v1567_v18 }
 0x1dd   :  { %1194 = vmatmul.mubr.msk.f32.gmra.mrb[6].mxu0 %vm84_vm0, %v1569_v16 }
 0x1de   :  { %1293 = vmatpush3.bf16.msra.mxu0 %v1290_v49 }
 0x1df   :  { %1295 = vmatprep.subr.bf16.mxu0 %v1294_v52 }
 0x1e2   :  { %1297 = vmatpush3.bf16.msra.mxu0 %v1294_v52 }
 0x1e3   :  { %1299 = vmatprep.subr.bf16.mxu0 %v1298_v56 }
 0x1e6   :  { %1301 = vmatpush3.bf16.msra.mxu0 %v1298_v56 }
 0x2ac   :  { %v1192_v59 = vpop.f32.mrb[4].mxu0 }
 0x2ad   :  { %v487_v60 = vadd.f32 %v1192_v59, %v402_v58  ;;  %v481_v61 = vpop.f32.mrb[5].mxu0 }
 0x2ae   :  { %v482_v62 = vadd.f32 %v481_v61, %v402_v58 }
 0x2af   :  { %v501_v0 = vmax.f32 %v487_v60, 0.0 }
 0x2b0   :  { %v500_v2 = vmax.f32 %v482_v62, 0.0  ;;  %v1195_v45 = vpop.f32.mrb[6].mxu0 }
 0x2b1   :  { %v505_v48 = vmin.f32 %v501_v0, 6.0  ;;  %v497_v55 = vadd.f32 %v1195_v45, %v402_v58  ;;  %v491_v32 = vpop.f32.mrb[7].mxu0 }
 0x2b2   :  { %v504_v63 = vmin.f32 %v500_v2, 6.0  ;;  %v492_v5 = vadd.f32 %v491_v32, %v402_v58  ;;  %v567_v2 = vrot.slane %v1052_v57, %v1509_v24 }
 0x2b3   :  { %v509_v6 = vrot.slane %v505_v48, 7  ;;  %v521_v10 = vrot.slane %v505_v48, 1  ;;  %v503_v12 = vmax.f32 %v497_v55, 0.0  ;;  %v545_v27 = vmul.f32 %v543_v3, %v505_v48 }
 0x2b4   :  { %v508_v13 = vrot.slane %v504_v63, 7  ;;  %v520_v19 = vrot.slane %v504_v63, 1  ;;  %v502_v20 = vmax.f32 %v492_v5, 0.0  ;;  %v544_v52 = vmul.f32 %v543_v3, %v504_v63 }
 0x2b5   :  { %v507_v22 = vmin.f32 %v503_v12, 6.0 }
 0x2b6   :  { %v514_v23 = vsel %vm194_vm1, %v508_v13, %v509_v6  ;;  %v526_v25 = vsel %vm207_vm2, %v520_v19, %v521_v10  ;;  %v506_v26 = vmin.f32 %v502_v20, 6.0 }
 0x2b7   :  { %v537_v28 = vmul.f32 %v535_v11, %v514_v23  ;;  %v511_v29 = vrot.slane %v507_v22, 7  ;;  %v523_v30 = vrot.slane %v507_v22, 1  ;;  %v547_v41 = vmul.f32 %v543_v3, %v507_v22 }
 0x2b8   :  { %v510_v34 = vrot.slane %v506_v26, 7  ;;  %v522_v15 = vrot.slane %v506_v26, 1  ;;  %v546_v59 = vmul.f32 %v543_v3, %v506_v26  ;;  %v556_v61 = vmul.f32 %v555_v33, %v526_v25  ;;  %v1065_v26 = vld [vmem:[%s1756_s1 + $0x40] sm:$0xff] }
 0x2b9   :  { %v549_v14 = vadd.f32 %v545_v27, %v537_v28  ;;  %v515_v39 = vsel %vm194_vm1, %v511_v29, %v508_v13  ;;  %v527_v40 = vsel %vm207_vm2, %v523_v30, %v520_v19  ;;  %v1066_v27 = vld [vmem:[%s1756_s1 + $0x48] sm:$0xff] }
 0x2ba   :  { %v516_v42 = vmul.f32 %v1502_v21, %v515_v39  ;;  %v531_v43 = vmul.f32 %v1492_v1, %v527_v40  ;;  %v512_v44 = vsel %vm194_vm1, %v510_v34, %v511_v29  ;;  %v513_v46 = vsel %vm194_vm1, %v509_v6, %v510_v34  ;;  %v1067_v29 = vld [vmem:[%s1756_s1 + $0x50] sm:$0xff] }
 0x2bb   :  { %v518_v47 = vmul.f32 %v1496_v4, %v513_v46  ;;  %v524_v49 = vsel %vm207_vm2, %v522_v15, %v523_v30  ;;  %v525_v50 = vsel %vm207_vm2, %v521_v10, %v522_v15  ;;  %v539_v51 = vmul.f32 %v535_v11, %v512_v44  ;;  %v1068_v30 = vld [vmem:[%s1756_s1 + $0x58] sm:$0xff] }
 0x2bc   :  { %v536_v53 = vmul.f32 %v535_v11, %v516_v42  ;;  %v529_v54 = vmul.f32 %v1500_v17, %v525_v50  ;;  %v559_v56 = vmul.f32 %v555_v33, %v531_v43  ;;  %v558_v48 = vmul.f32 %v555_v33, %v524_v49  ;;  %v1061_v42 = vld [vmem:[%s1755_s0 + $0x40] sm:$0xff]  ;;  %v1062_v43 = vld [vmem:[%s1755_s0 + $0x48] sm:$0xff] }
 0x2bd   :  { %v538_v58 = vmul.f32 %v535_v11, %v518_v47  ;;  %v551_v60 = vadd.f32 %v547_v41, %v539_v51  ;;  %v1302_v28 = vpack.c.bf16 %v1066_v27, %v1065_v26  ;;  %v684_v34 = vrot.slane %v1405_v8, %v1480_v38 }
 0x2be   :  { %v557_v62 = vmul.f32 %v555_v33, %v529_v54  ;;  %v548_v0 = vadd.f32 %v544_v52, %v536_v53  ;;  %v1306_v33 = vpack.c.bf16 %v1068_v30, %v1067_v29  ;;  %v1063_v52 = vld [vmem:[%s1755_s0 + $0x50] sm:$0xff]  ;;  %v1064_v53 = vld [vmem:[%s1755_s0 + $0x58] sm:$0xff] }
 0x2bf   :  { %v550_v45 = vadd.f32 %v546_v59, %v538_v58  ;;  %v563_v55 = vadd.f32 %v559_v56, %v551_v60  ;;  %1303 = vmatprep.subr.bf16.mxu1 %v1302_v28  ;;  %v1069_v56 = vld [vmem:[%s1757_s2 + $0x80] sm:$0xff]  ;;  %v1070_v58 = vld [vmem:[%s1757_s2 + $0x88] sm:$0xff]  ;;  %v1071_v60 = vld [vmem:[%s1757_s2 + $0x90] sm:$0xff] }
 0x2c0   :  { %v561_v32 = vadd.f32 %v557_v62, %v549_v14  ;;  %v560_v5 = vadd.f32 %v556_v61, %v548_v0  ;;  %1305 = vmatpush3.bf16.msra.mxu1 %v1302_v28  ;;  %v1310_v59 = vpack.c.bf16 %v1070_v58, %v1069_v56  ;;  %v1072_v61 = vld [vmem:[%s1757_s2 + $0x98] sm:$0xff]  ;;  %v1073_v0 = vld [vmem:[%s1757_s2 + $0xa0] sm:$0xff] }
 0x2c1   :  { %v562_v6 = vadd.f32 %v558_v48, %v550_v45  ;;  %v571_v13 = vadd.f32 %v567_v2, %v563_v55  ;;  %1307 = vmatprep.subr.bf16.mxu1 %v1306_v33  ;;  %v1314_v62 = vpack.c.bf16 %v1072_v61, %v1071_v60  ;;  %v1075_v48 = vld [vmem:[%s1757_s2 + $0xb0] sm:$0xff]  ;;  %v1076_v55 = vld [vmem:[%s1757_s2 + $0xb8] sm:$0xff] }
 0x2c2   :  { %v568_v10 = vadd.f32 %v567_v2, %v560_v5  ;;  %v569_v63 = vadd.f32 %v567_v2, %v561_v32  ;;  %v1322_v32 = vpack.c.bf16 %v1076_v55, %v1075_v48  ;;  %v1077_v5 = vld [vmem:[%s1758_s3 + $0x10] sm:$0x1f] }
 0x2c3   :  { %v570_v12 = vadd.f32 %v567_v2, %v562_v6  ;;  %v575_v25 = vmax.f32 %v571_v13, 0.0  ;;  %v1074_v2 = vld [vmem:[%s1757_s2 + $0xa8] sm:$0xff]  ;;  %v717_v6 = vrot.slane %v1077_v5, %v1465_v31  ;;  %v850_v29 = vrot.slane %v1077_v5, %v1480_v38  ;;  %s1355_s2 = smov [#allocation2]  }
 0x2c4   :  { %v572_v19 = vmax.f32 %v568_v10, 0.0  ;;  %v573_v20 = vmax.f32 %v569_v63, 0.0  ;;  %1309 = vmatpush3.bf16.msra.mxu1 %v1306_v33  ;;  %v1318_v45 = vpack.c.bf16 %v1074_v2, %v1073_v0  ;;  %s1013_s3 = sshll.u32 %s1355_s2, 4  ;;  %s1014_s3 = int_to_ptr.vmem [resolvable:$true] %s1013_s3 }
 0x2c5   :  { %v574_v11 = vmax.f32 %v570_v12, 0.0  ;;  %v579_v57 = vmin.f32 %v575_v25, 6.0  ;;  %1311 = vmatprep.subr.bf16.mxu1 %v1310_v59  ;;  %v858_v25 = vrot.slane %v1077_v5, %v1476_v35  ;;  %s1330_s16 = scalar_lea.vmem %s1014_s3, 512  ;;  %p1335_p1 = scmp.lt.s32.totalorder %s1014_s3, %s1014_s3 }
 0x2c6   :  { %v576_v3 = vmin.f32 %v572_v19, 6.0  ;;  %v577_v22 = vmin.f32 %v573_v20, 6.0  ;;  %p1331_p0 = scmp.ne.s32.totalorder %s1014_s3, %s1330_s16  ;;  %p1336_p2 = scmp.lt.s32.totalorder %s1330_s16, %s1330_s16 }
 0x2c7   :  { %v578_v23 = vmin.f32 %v574_v11, 6.0 }
 0x2c8   :  { %1212 = vmatprep.mubr.msk.f32.mxu0 %vm264_vm7, %v576_v3  ;;  %p1337_p3 = por %p1336_p2, %p1335_p1 }
 0x2c9   :  { %1213 = vmatmul.mubr.msk.f32.vlgmr.msra.gmra.mrb[8].mxu0 %vm264_vm7, %v577_v22 }
 0x2ca   :  { %1215 = vmatprep.mubr.msk.f32.mxu0 %vm264_vm7, %v578_v23  ;;  %p1338_p4 = pnand %p1337_p3, %p1331_p0 }
 0x2cd   :  { %1216 = vmatmul.mubr.msk.f32.gmra.mrb[10].mxu0 %vm264_vm7, %v579_v57 }
 0x39c   :  { %v1214_v15 = vpop.f32.mrb[8].mxu0 }
 0x39d   :  { %v678_v14 = vadd.f32 %v1214_v15, %v1555_v37  ;;  %v658_v39 = vpop.f32.mrb[9].mxu0 }
 0x39e   :  { %v677_v40 = vadd.f32 %v658_v39, %v1552_v36 }
 0x39f   :  { %v686_v41 = vadd.f32 %v684_v34, %v678_v14 }
 0x3a0   :  { %v685_v44 = vadd.f32 %v684_v34, %v677_v40  ;;  %v1217_v46 = vpop.f32.mrb[10].mxu0 }
 0x3a1   :  { %v680_v47 = vadd.f32 %v1217_v46, %v1569_v16  ;;  %v668_v49 = vpop.f32.mrb[11].mxu0  ;;  %v1657_v51 = vadd.f32 %v1062_v43, %v686_v41  ;;  %v870_v46 = vrot.slane %v1077_v5, %v1408_v9 }
 0x3a2   :  { %v1654_v50 = vadd.f32 %v1061_v42, %v685_v44  ;;  %v679_v37 = vadd.f32 %v668_v49, %v1567_v18 }
 0x3a3   :  { %v688_v36 = vadd.f32 %v684_v34, %v680_v47 }
 0x3a4   :  { %v687_v54 = vadd.f32 %v684_v34, %v679_v37  ;;  %1226 = vmatprep.mubr.msk.f32.mxu1 %vm84_vm0, %v1654_v50 }
 0x3a5   :  { %1227 = vmatmul.mubr.msk.f32.vlgmr.msra.gmra.mrb[4].mxu1 %vm84_vm0, %v1657_v51  ;;  %v1671_v18 = vadd.f32 %v1064_v53, %v688_v36 }
 0x3a6   :  { %v1669_v16 = vadd.f32 %v1063_v52, %v687_v54  ;;  %1313 = vmatpush3.bf16.msra.mxu1 %v1310_v59 }
 0x3a7   :  { %1315 = vmatprep.subr.bf16.mxu1 %v1314_v62 }
 0x3a8   :  { %1229 = vmatprep.mubr.msk.f32.mxu1 %vm84_vm0, %v1669_v16 }
 0x3a9   :  { %1230 = vmatmul.mubr.msk.f32.gmra.mrb[6].mxu1 %vm84_vm0, %v1671_v18 }
 0x3aa   :  { %1317 = vmatpush3.bf16.msra.mxu1 %v1314_v62 }
 0x3ab   :  { %1319 = vmatprep.subr.bf16.mxu1 %v1318_v45 }
 0x3ae   :  { %1321 = vmatpush3.bf16.msra.mxu1 %v1318_v45 }
 0x3af   :  { %1323 = vmatprep.subr.bf16.mxu1 %v1322_v32 }
 0x3b2   :  { %1325 = vmatpush3.bf16.msra.mxu1 %v1322_v32 }
 0x478   :  { %v1228_v10 = vpop.f32.mrb[4].mxu1 }
 0x479   :  { %v802_v63 = vadd.f32 %v1228_v10, %v717_v6  ;;  %v796_v12 = vpop.f32.mrb[5].mxu1 }
 0x47a   :  { %v797_v13 = vadd.f32 %v796_v12, %v717_v6 }
 0x47b   :  { %v816_v19 = vmax.f32 %v802_v63, 0.0 }
 0x47c   :  { %v815_v20 = vmax.f32 %v797_v13, 0.0  ;;  %v1231_v11 = vpop.f32.mrb[6].mxu1 }
 0x47d   :  { %v820_v3 = vmin.f32 %v816_v19, 6.0  ;;  %v812_v22 = vadd.f32 %v1231_v11, %v717_v6  ;;  %v806_v23 = vpop.f32.mrb[7].mxu1 }
 0x47e   :  { %v819_v57 = vmin.f32 %v815_v20, 6.0  ;;  %v807_v26 = vadd.f32 %v806_v23, %v717_v6 }
 0x47f   :  { %v824_v27 = vrot.slane %v820_v3, 7  ;;  %v836_v28 = vrot.slane %v820_v3, 1  ;;  %v818_v30 = vmax.f32 %v812_v22, 0.0  ;;  %v860_v41 = vmul.f32 %v858_v25, %v820_v3 }
 0x480   :  { %v823_v31 = vrot.slane %v819_v57, 7  ;;  %v835_v33 = vrot.slane %v819_v57, 1  ;;  %v817_v34 = vmax.f32 %v807_v26, 0.0  ;;  %v859_v62 = vmul.f32 %v858_v25, %v819_v57 }
 0x481   :  { %v822_v15 = vmin.f32 %v818_v30, 6.0 }
 0x482   :  { %v829_v14 = vsel %vm194_vm1, %v823_v31, %v824_v27  ;;  %v841_v39 = vsel %vm207_vm2, %v835_v33, %v836_v28  ;;  %v821_v40 = vmin.f32 %v817_v34, 6.0 }
 0x483   :  { %v852_v42 = vmul.f32 %v850_v29, %v829_v14  ;;  %v826_v43 = vrot.slane %v822_v15, 7  ;;  %v838_v44 = vrot.slane %v822_v15, 1  ;;  %v862_v52 = vmul.f32 %v858_v25, %v822_v15 }
 0x484   :  { %v825_v47 = vrot.slane %v821_v40, 7  ;;  %v837_v38 = vrot.slane %v821_v40, 1  ;;  %v861_v45 = vmul.f32 %v858_v25, %v821_v40  ;;  %v871_v55 = vmul.f32 %v870_v46, %v841_v39 }
 0x485   :  { %v864_v49 = vadd.f32 %v860_v41, %v852_v42  ;;  %v830_v37 = vsel %vm194_vm1, %v826_v43, %v823_v31  ;;  %v842_v36 = vsel %vm207_vm2, %v838_v44, %v835_v33 }
 0x486   :  { %v831_v53 = vmul.f32 %v1502_v21, %v830_v37  ;;  %v846_v54 = vmul.f32 %v1492_v1, %v842_v36  ;;  %v827_v56 = vsel %vm194_vm1, %v825_v47, %v826_v43  ;;  %v828_v9 = vsel %vm194_vm1, %v824_v27, %v825_v47 }
 0x487   :  { %v833_v58 = vmul.f32 %v1496_v4, %v828_v9  ;;  %v839_v59 = vsel %vm207_vm2, %v837_v38, %v838_v44  ;;  %v840_v60 = vsel %vm207_vm2, %v836_v28, %v837_v38  ;;  %v854_v61 = vmul.f32 %v850_v29, %v827_v56 }
 0x488   :  { %v851_v0 = vmul.f32 %v850_v29, %v831_v53  ;;  %v844_v21 = vmul.f32 %v1500_v17, %v840_v60  ;;  %v874_v1 = vmul.f32 %v870_v46, %v846_v54  ;;  %v882_v4 = vrot.slane %v1077_v5, %v1509_v24 }
 0x489   :  { %v853_v2 = vmul.f32 %v850_v29, %v833_v58  ;;  %v866_v48 = vadd.f32 %v862_v52, %v854_v61  ;;  %v873_v63 = vmul.f32 %v870_v46, %v839_v59  ;;  %v999_v5 = vrot.slane %v1405_v8, %v1476_v35 }
 0x48a   :  { %v872_v32 = vmul.f32 %v870_v46, %v844_v21  ;;  %v863_v6 = vadd.f32 %v859_v62, %v851_v0 }
 0x48b   :  { %v865_v10 = vadd.f32 %v861_v45, %v853_v2  ;;  %v878_v12 = vadd.f32 %v874_v1, %v866_v48 }
 0x48c   :  { %v876_v13 = vadd.f32 %v872_v32, %v864_v49  ;;  %v875_v7 = vadd.f32 %v871_v55, %v863_v6 }
 0x48d   :  { %v877_v19 = vadd.f32 %v873_v63, %v865_v10  ;;  %v886_v22 = vadd.f32 %v882_v4, %v878_v12 }
 0x48e   :  { %v883_v20 = vadd.f32 %v882_v4, %v875_v7  ;;  %v884_v11 = vadd.f32 %v882_v4, %v876_v13 }
 0x48f   :  { %v885_v3 = vadd.f32 %v882_v4, %v877_v19  ;;  %v890_v28 = vmax.f32 %v886_v22, 0.0 }
 0x490   :  { %v887_v17 = vmax.f32 %v883_v20, 0.0  ;;  %v888_v23 = vmax.f32 %v884_v11, 0.0 }
 0x491   :  { %v889_v57 = vmax.f32 %v885_v3, 0.0  ;;  %v894_v24 = vmin.f32 %v890_v28, 6.0 }
 0x492   :  { %v891_v25 = vmin.f32 %v887_v17, 6.0  ;;  %v892_v26 = vmin.f32 %v888_v23, 6.0 }
 0x493   :  { %v893_v27 = vmin.f32 %v889_v57, 6.0 }
 0x494   :  { %1248 = vmatprep.mubr.msk.f32.mxu1 %vm264_vm7, %v891_v25 }
 0x495   :  { %1249 = vmatmul.mubr.msk.f32.vlgmr.msra.gmra.mrb[8].mxu1 %vm264_vm7, %v892_v26 }
 0x496   :  { %1251 = vmatprep.mubr.msk.f32.mxu1 %vm264_vm7, %v893_v27 }
 0x499   :  { %1252 = vmatmul.mubr.msk.f32.gmra.mrb[10].mxu1 %vm264_vm7, %v894_v24 }
 0x568   :  { %v1250_v29 = vpop.f32.mrb[8].mxu1 }
 0x569   :  { %v993_v30 = vadd.f32 %v1250_v29, %v1657_v51  ;;  %v973_v31 = vpop.f32.mrb[9].mxu1 }
 0x56a   :  { %v992_v33 = vadd.f32 %v973_v31, %v1654_v50 }
 0x56b   :  { %v1001_v34 = vadd.f32 %v999_v5, %v993_v30 }
 0x56c   :  { %v1000_v15 = vadd.f32 %v999_v5, %v992_v33  ;;  %v1253_v14 = vpop.f32.mrb[10].mxu1 }
 0x56d   :  { %1005 = vst.msk [vmem:[#allocation2 + $0x8] sm:$0xff] %vm84_vm0, %v1001_v34  ;;  %v995_v39 = vadd.f32 %v1253_v14, %v1671_v18  ;;  %v983_v40 = vpop.f32.mrb[11].mxu1 }
 0x56e   :  { %1004 = vst.msk [vmem:[#allocation2] sm:$0xff] %vm84_vm0, %v1000_v15  ;;  %v994_v8 = vadd.f32 %v983_v40, %v1669_v16 }
 0x56f   :  { %v1003_v35 = vadd.f32 %v999_v5, %v995_v39 }
 0x570   :  { %v1002_v41 = vadd.f32 %v999_v5, %v994_v8 }
 0x571   :  { %1007 = vst.msk [vmem:[#allocation2 + $0x18] sm:$0xff] %vm84_vm0, %v1003_v35 }
 0x572   :  { %1006 = vst.msk [vmem:[#allocation2 + $0x10] sm:$0xff] %vm84_vm0, %v1002_v41 }
 0x573   :  { %1341 = shalt.err (!%p1338_p4)
}
 0x574   :  { %s1342_s19 = scalar_lea.hbm %s1760_s5, 512 }
 0x575   :  { %p1343_p5 = scmp.ne.s32.totalorder %s1760_s5, %s1342_s19  ;;  %p1346_p6 = scmp.lt.u32.totalorder %s1342_s19, %s1760_s5 }
 0x577   :  { %p1348_p7 = pnand %p1346_p6, %p1343_p5 }
 0x579   :  { %1351 = shalt.err (!%p1348_p7)
}
 0x57a   :  { %s1356_s23 = smov 128   ;;  %s1357_s24 = smov 8  }
 0x57b   :  { %1019 = dma.vmem_to_hbm [thread:$0]  %s1014_s3, 512, %s1760_s5, [#allocation3], %s1356_s23, %s1356_s23, %s1357_s24  }
 0x57c   :  { %1352 = dma.done.wait [#allocation3], 512  }
 0x57d   :  { %1353 = vsyncadd [#allocation3], 4294966784 }
 0x57e   :  { %1023 = vsyncpa [#allocation3], 1 }

</bundles_post_ra>
